<compile_context>
chip_gen: v7x
topology: tpu7x:2x2x1
jax: 0.10.0
libtpu: 0.0.40
codegen_flags: <defaults>
</compile_context>

<pallas_src>
import jax
import jax.numpy as jnp
import numpy as np
from jax.experimental import pallas as pl
from jax.experimental.pallas import tpu as pltpu

HIDDEN = 10
LANES = 128

# (input_dim, in_hidden_dim, hidden_dim, output_dims) for the 4 StageNets
STAGE_CFG = [
    (2, 2, HIDDEN, [2, 2]),
    (1, HIDDEN, HIDDEN, [2, 2, 2]),
    (1, HIDDEN, HIDDEN, [2, 2]),
    (1, HIDDEN, HIDDEN, [2]),
]
HEAD_DIMS = [d for cfg in STAGE_CFG for d in cfg[3]]   # [2]*8
HEAD_WIDTH = sum(HEAD_DIMS)                            # 16

# ---------------- packed parameter slab layout (rows, 128 lanes) -------------
W_INP_OFF = 0          # rows 0:8   : block-diag fc_inp weights + folded bias row
INP_BIAS_ROW = 5       #   row 5    : fc_inp.bias + fc_hid[2].bias (per stage)
W_HEADS_OFF = 8        # rows 8:48  : block-diag head weights + hid4 identity
B_HEADS_OFF = 48       # row 48     : head biases (cols 0:16), zeros elsewhere
B_A_OFF = 49           # rows 49:53 : fc_hid[0].bias per stage (cols 0:10)
W_HID_OFF = 56         # rows 56+32s: fc_hid[0].W ; rows 56+32s+16: fc_hid[2].W
STAGE_STRIDE = 32
TOTAL_ROWS = W_HID_OFF + 4 * STAGE_STRIDE              # 184 (multiple of 8)
HID_COL_OFF = HEAD_WIDTH                               # final hidden at cols 16:26


# ----------------------------- Pallas kernel --------------------------------

def _parallelnet_kernel(x_ref, p_ref, o_ref):
    X = x_ref[...]                                     # (Bp, 128)

    # All four fc_inp(x_s) (+ folded biases) in ONE matmul:
    #   X cols 0:5 = [s1|s2|s3|s4], col 5 = 1.0 (bias), cols 6:8 hit zero rows.
    inp_all = jnp.dot(X[:, 0:8], p_ref[0:8, :],
                      preferred_element_type=jnp.float32)   # (Bp, 128); 0:40 valid

    # hidden_0 = subjemb, zero-padded to width 10 (weight rows 2:10 are zero).
    hid = X[:, 6:6 + HIDDEN]                           # (Bp, 10)
    hids = []
    for s in range(4):                                 # static Python unroll
        base = W_HID_OFF + STAGE_STRIDE * s
        wa = p_ref[base:base + HIDDEN, 0:HIDDEN]                     # fc_hid[0].W
        wb = p_ref[base + 16:base + 16 + HIDDEN, 0:HIDDEN]           # fc_hid[2].W
        ba = p_ref[B_A_OFF + s:B_A_OFF + s + 1, 0:HIDDEN]            # fc_hid[0].b
        t = jnp.tanh(jnp.dot(hid, wa, preferred_element_type=jnp.float32) + ba)
        hid = jnp.tanh(inp_all[:, HIDDEN * s:HIDDEN * (s + 1)]
                       + jnp.dot(t, wb, preferred_element_type=jnp.float32))
        hids.append(hid)

    # All 8 heads + final-hidden passthrough in ONE lane-dense matmul + store.
    H = jnp.concatenate(hids, axis=1)                  # (Bp, 40)
    o_ref[...] = (jnp.dot(H, p_ref[W_HEADS_OFF:W_HEADS_OFF + 40, :],
                          preferred_element_type=jnp.float32)
                  + p_ref[B_HEADS_OFF:B_HEADS_OFF + 1, :])


# ----------------------------- parameter init -------------------------------

def init_params(key):
    """PyTorch-style per-layer params (W stored as (in, out), b as (out,))."""
    def lin(k, d_in, d_out):
        kw, kb = jax.random.split(k)
        bound = 1.0 / np.sqrt(d_in)
        w = jax.random.uniform(kw, (d_in, d_out), jnp.float32, -bound, bound)
        b = jax.random.uniform(kb, (d_out,), jnp.float32, -bound, bound)
        return w, b

    stages = []
    for (in_dim, in_hid, hid, out_dims) in STAGE_CFG:
        key, k1, k2, k3 = jax.random.split(key, 4)
        st = {
            "fc_inp": lin(k1, in_dim, hid),
            "fc_hid0": lin(k2, in_hid, hid),
            "fc_hid2": lin(k3, hid, hid),
            "fc_out": [],
        }
        for od in out_dims:
            key, ko = jax.random.split(key)
            st["fc_out"].append(lin(ko, hid, od))
        stages.append(st)
    return stages


def pack_params(stages):
    """Pack all ParallelNet parameters into one (184, 128) f32 slab."""
    slab = np.zeros((TOTAL_ROWS, LANES), np.float32)

    # Block-diagonal fused fc_inp weights + folded bias row.
    row = 0
    for s, st in enumerate(stages):
        w_inp, b_inp = st["fc_inp"]
        _, b_b = st["fc_hid2"]
        d_in = w_inp.shape[0]
        slab[row:row + d_in, HIDDEN * s:HIDDEN * (s + 1)] = np.asarray(w_inp)
        slab[INP_BIAS_ROW, HIDDEN * s:HIDDEN * (s + 1)] = (
            np.asarray(b_inp) + np.asarray(b_b))       # fold fc_hid[2].bias here
        row += d_in

    # Block-diagonal head weights/biases + identity passthrough of hidden4.
    col = 0
    for s, st in enumerate(stages):
        r0 = W_HEADS_OFF + HIDDEN * s
        for (w, b) in st["fc_out"]:
            d = w.shape[1]
            slab[r0:r0 + HIDDEN, col:col + d] = np.asarray(w)
            slab[B_HEADS_OFF, col:col + d] = np.asarray(b)
            col += d
    slab[W_HEADS_OFF + 3 * HIDDEN:W_HEADS_OFF + 4 * HIDDEN,
         col:col + HIDDEN] = np.eye(HIDDEN, dtype=np.float32)

    # Hidden-path (fc_hid) weights and first-linear biases.
    for s, st in enumerate(stages):
        w_a, b_a = st["fc_hid0"]
        w_b, _ = st["fc_hid2"]
        base = W_HID_OFF + STAGE_STRIDE * s
        slab[base:base + w_a.shape[0], 0:HIDDEN] = np.asarray(w_a)
        slab[base + 16:base + 16 + HIDDEN, 0:HIDDEN] = np.asarray(w_b)
        slab[B_A_OFF + s, 0:HIDDEN] = np.asarray(b_a)

    return jnp.asarray(slab)


# ----------------------------- wrapper ---------------------------------------

def parallelnet_forward(packed_params, s1, s2, s3, s4, subjemb):
    """Pallas implementation of ParallelNet.forward."""
    B = s1.shape[0]
    Bp = ((B + 7) // 8) * 8                             # pad batch to sublane mult.

    # One lane-dense input slab: [s1|s2|s3|s4|1|subjemb|zeros...] -> (Bp, 128).
    x_core = jnp.concatenate(
        [s1, s2, s3, s4, jnp.ones((B, 1), jnp.float32), subjemb], axis=1)
    X = jnp.zeros((Bp, LANES), jnp.float32).at[:B, :x_core.shape[1]].set(x_core)

    vmem = pl.BlockSpec(memory_space=pltpu.MemorySpace.VMEM)
    out = pl.pallas_call(
        _parallelnet_kernel,
        out_shape=jax.ShapeDtypeStruct((Bp, LANES), jnp.float32),
        in_specs=[vmem, vmem],
        out_specs=vmem,
    )(X, packed_params)
    # TODO(synk): add a batch grid (multiple-of-8 tiles, dimension_semantics=
    # ("parallel",)) once B grows beyond toy sizes to use both v7x TensorCores.

    # Split the single (Bp, 128) output slab back into the 9 result arrays.
    per_stage, off = [], 0
    for cfg in STAGE_CFG:
        outs = []
        for d in cfg[3]:
            outs.append(out[:B, off:off + d])
            off += d
        per_stage.append(outs)
    hidden = out[:B, HID_COL_OFF:HID_COL_OFF + HIDDEN]
    return per_stage[0], per_stage[1], per_stage[2], per_stage[3], hidden


# ----------------------------- pure-JAX reference ----------------------------

def ref_forward(stages, s1, s2, s3, s4, subjemb):
    hidden = subjemb
    all_outs = []
    for st, x in zip(stages, [s1, s2, s3, s4]):
        w_inp, b_inp = st["fc_inp"]
        w_a, b_a = st["fc_hid0"]
        w_b, b_b = st["fc_hid2"]
        h = (x @ w_inp + b_inp) + (jnp.tanh(hidden @ w_a + b_a) @ w_b + b_b)
        hidden = jnp.tanh(h)
        all_outs.append([hidden @ w + b for (w, b) in st["fc_out"]])
    return all_outs, hidden


# ----------------------------- main -------------------------------------------

if __name__ == "__main__":
    key = jax.random.PRNGKey(0)
    B = 4
    kp, k1, k2, k3, k4, ke = jax.random.split(key, 6)

    stages = init_params(kp)
    packed = pack_params(stages)

    stage1inp = jax.random.normal(k1, (B, 2), dtype=jnp.float32)
    stage2inp = jax.random.normal(k2, (B, 1), dtype=jnp.float32)
    stage3inp = jax.random.normal(k3, (B, 1), dtype=jnp.float32)
    stage4inp = jax.random.normal(k4, (B, 1), dtype=jnp.float32)
    subjemb = jax.random.normal(ke, (B, 2), dtype=jnp.float32)

    out1, out2, out3, out4, hidden = parallelnet_forward(
        packed, stage1inp, stage2inp, stage3inp, stage4inp, subjemb)
    jax.block_until_ready(hidden)

    # correctness check against pure-JAX reference
    ref_outs, ref_hidden = ref_forward(
        stages, stage1inp, stage2inp, stage3inp, stage4inp, subjemb)
    flat_kernel = list(out1) + list(out2) + list(out3) + list(out4) + [hidden]
    flat_ref = ref_outs[0] + ref_outs[1] + ref_outs[2] + ref_outs[3] + [ref_hidden]
    for a, b in zip(flat_kernel, flat_ref):
        np.testing.assert_allclose(np.asarray(a), np.asarray(b),
                                   rtol=1e-5, atol=1e-5)

    print("KERNEL_OK")
</pallas_src>

<mosaic_0001>
module attributes {stable_mosaic.version = 11 : i64} {
  func.func @_parallelnet_kernel(%arg0: memref<8x128xf32, #tpu.memory_space<vmem>>, %arg1: memref<184x128xf32, #tpu.memory_space<vmem>>, %arg2: memref<8x128xf32, #tpu.memory_space<vmem>>) attributes {dimension_semantics = [], scalar_prefetch = 0 : i64, scratch_operands = 0 : i64, tpu.core_type = #tpu.core_type<tc>} {
    %c0 = arith.constant 0 : index
    %c0_0 = arith.constant 0 : index
    %0 = vector.load %arg0[%c0, %c0_0] : memref<8x128xf32, #tpu.memory_space<vmem>>, vector<8x128xf32>
    %1 = vector.extract_strided_slice %0 {offsets = [0, 0], sizes = [8, 8], strides = [1, 1]} : vector<8x128xf32> to vector<8x8xf32>
    %c0_1 = arith.constant 0 : index
    %c0_2 = arith.constant 0 : index
    %2 = vector.load %arg1[%c0_1, %c0_2] : memref<184x128xf32, #tpu.memory_space<vmem>>, vector<8x128xf32>
    %cst = arith.constant dense<0.000000e+00> : vector<8x128xf32>
    %3 = tpu.matmul %1, %2, %cst {dimension_numbers = #tpu.dot_dimension_numbers<[1], [0], [0], [1], [0, 0, 1, 1], [], []>} : vector<8x8xf32>, vector<8x128xf32>, vector<8x128xf32> -> vector<8x128xf32>
    %4 = vector.extract_strided_slice %0 {offsets = [0, 6], sizes = [8, 10], strides = [1, 1]} : vector<8x128xf32> to vector<8x10xf32>
    %c56 = arith.constant 56 : index
    %c0_3 = arith.constant 0 : index
    %5 = vector.load %arg1[%c56, %c0_3] : memref<184x128xf32, #tpu.memory_space<vmem>>, vector<10x10xf32>
    %c72 = arith.constant 72 : index
    %c0_4 = arith.constant 0 : index
    %6 = vector.load %arg1[%c72, %c0_4] : memref<184x128xf32, #tpu.memory_space<vmem>>, vector<10x10xf32>
    %c49 = arith.constant 49 : index
    %c0_5 = arith.constant 0 : index
    %7 = vector.load %arg1[%c49, %c0_5] : memref<184x128xf32, #tpu.memory_space<vmem>>, vector<1x10xf32>
    %cst_6 = arith.constant dense<0.000000e+00> : vector<8x10xf32>
    %8 = tpu.matmul %4, %5, %cst_6 {dimension_numbers = #tpu.dot_dimension_numbers<[1], [0], [0], [1], [0, 0, 1, 1], [], []>} : vector<8x10xf32>, vector<10x10xf32>, vector<8x10xf32> -> vector<8x10xf32>
    %9 = vector.broadcast %7 : vector<1x10xf32> to vector<8x10xf32>
    %10 = arith.addf %8, %9 : vector<8x10xf32>
    %11 = math.tanh %10 : vector<8x10xf32>
    %12 = vector.extract_strided_slice %3 {offsets = [0, 0], sizes = [8, 10], strides = [1, 1]} : vector<8x128xf32> to vector<8x10xf32>
    %cst_7 = arith.constant dense<0.000000e+00> : vector<8x10xf32>
    %13 = tpu.matmul %11, %6, %cst_7 {dimension_numbers = #tpu.dot_dimension_numbers<[1], [0], [0], [1], [0, 0, 1, 1], [], []>} : vector<8x10xf32>, vector<10x10xf32>, vector<8x10xf32> -> vector<8x10xf32>
    %14 = arith.addf %12, %13 : vector<8x10xf32>
    %15 = math.tanh %14 : vector<8x10xf32>
    %c88 = arith.constant 88 : index
    %c0_8 = arith.constant 0 : index
    %16 = vector.load %arg1[%c88, %c0_8] : memref<184x128xf32, #tpu.memory_space<vmem>>, vector<10x10xf32>
    %c104 = arith.constant 104 : index
    %c0_9 = arith.constant 0 : index
    %17 = vector.load %arg1[%c104, %c0_9] : memref<184x128xf32, #tpu.memory_space<vmem>>, vector<10x10xf32>
    %c50 = arith.constant 50 : index
    %c0_10 = arith.constant 0 : index
    %18 = vector.load %arg1[%c50, %c0_10] : memref<184x128xf32, #tpu.memory_space<vmem>>, vector<1x10xf32>
    %cst_11 = arith.constant dense<0.000000e+00> : vector<8x10xf32>
    %19 = tpu.matmul %15, %16, %cst_11 {dimension_numbers = #tpu.dot_dimension_numbers<[1], [0], [0], [1], [0, 0, 1, 1], [], []>} : vector<8x10xf32>, vector<10x10xf32>, vector<8x10xf32> -> vector<8x10xf32>
    %20 = vector.broadcast %18 : vector<1x10xf32> to vector<8x10xf32>
    %21 = arith.addf %19, %20 : vector<8x10xf32>
    %22 = math.tanh %21 : vector<8x10xf32>
    %23 = vector.extract_strided_slice %3 {offsets = [0, 10], sizes = [8, 10], strides = [1, 1]} : vector<8x128xf32> to vector<8x10xf32>
    %cst_12 = arith.constant dense<0.000000e+00> : vector<8x10xf32>
    %24 = tpu.matmul %22, %17, %cst_12 {dimension_numbers = #tpu.dot_dimension_numbers<[1], [0], [0], [1], [0, 0, 1, 1], [], []>} : vector<8x10xf32>, vector<10x10xf32>, vector<8x10xf32> -> vector<8x10xf32>
    %25 = arith.addf %23, %24 : vector<8x10xf32>
    %26 = math.tanh %25 : vector<8x10xf32>
    %c120 = arith.constant 120 : index
    %c0_13 = arith.constant 0 : index
    %27 = vector.load %arg1[%c120, %c0_13] : memref<184x128xf32, #tpu.memory_space<vmem>>, vector<10x10xf32>
    %c136 = arith.constant 136 : index
    %c0_14 = arith.constant 0 : index
    %28 = vector.load %arg1[%c136, %c0_14] : memref<184x128xf32, #tpu.memory_space<vmem>>, vector<10x10xf32>
    %c51 = arith.constant 51 : index
    %c0_15 = arith.constant 0 : index
    %29 = vector.load %arg1[%c51, %c0_15] : memref<184x128xf32, #tpu.memory_space<vmem>>, vector<1x10xf32>
    %cst_16 = arith.constant dense<0.000000e+00> : vector<8x10xf32>
    %30 = tpu.matmul %26, %27, %cst_16 {dimension_numbers = #tpu.dot_dimension_numbers<[1], [0], [0], [1], [0, 0, 1, 1], [], []>} : vector<8x10xf32>, vector<10x10xf32>, vector<8x10xf32> -> vector<8x10xf32>
    %31 = vector.broadcast %29 : vector<1x10xf32> to vector<8x10xf32>
    %32 = arith.addf %30, %31 : vector<8x10xf32>
    %33 = math.tanh %32 : vector<8x10xf32>
    %34 = vector.extract_strided_slice %3 {offsets = [0, 20], sizes = [8, 10], strides = [1, 1]} : vector<8x128xf32> to vector<8x10xf32>
    %cst_17 = arith.constant dense<0.000000e+00> : vector<8x10xf32>
    %35 = tpu.matmul %33, %28, %cst_17 {dimension_numbers = #tpu.dot_dimension_numbers<[1], [0], [0], [1], [0, 0, 1, 1], [], []>} : vector<8x10xf32>, vector<10x10xf32>, vector<8x10xf32> -> vector<8x10xf32>
    %36 = arith.addf %34, %35 : vector<8x10xf32>
    %37 = math.tanh %36 : vector<8x10xf32>
    %c152 = arith.constant 152 : index
    %c0_18 = arith.constant 0 : index
    %38 = vector.load %arg1[%c152, %c0_18] : memref<184x128xf32, #tpu.memory_space<vmem>>, vector<10x10xf32>
    %c168 = arith.constant 168 : index
    %c0_19 = arith.constant 0 : index
    %39 = vector.load %arg1[%c168, %c0_19] : memref<184x128xf32, #tpu.memory_space<vmem>>, vector<10x10xf32>
    %c52 = arith.constant 52 : index
    %c0_20 = arith.constant 0 : index
    %40 = vector.load %arg1[%c52, %c0_20] : memref<184x128xf32, #tpu.memory_space<vmem>>, vector<1x10xf32>
    %cst_21 = arith.constant dense<0.000000e+00> : vector<8x10xf32>
    %41 = tpu.matmul %37, %38, %cst_21 {dimension_numbers = #tpu.dot_dimension_numbers<[1], [0], [0], [1], [0, 0, 1, 1], [], []>} : vector<8x10xf32>, vector<10x10xf32>, vector<8x10xf32> -> vector<8x10xf32>
    %42 = vector.broadcast %40 : vector<1x10xf32> to vector<8x10xf32>
    %43 = arith.addf %41, %42 : vector<8x10xf32>
    %44 = math.tanh %43 : vector<8x10xf32>
    %45 = vector.extract_strided_slice %3 {offsets = [0, 30], sizes = [8, 10], strides = [1, 1]} : vector<8x128xf32> to vector<8x10xf32>
    %cst_22 = arith.constant dense<0.000000e+00> : vector<8x10xf32>
    %46 = tpu.matmul %44, %39, %cst_22 {dimension_numbers = #tpu.dot_dimension_numbers<[1], [0], [0], [1], [0, 0, 1, 1], [], []>} : vector<8x10xf32>, vector<10x10xf32>, vector<8x10xf32> -> vector<8x10xf32>
    %47 = arith.addf %45, %46 : vector<8x10xf32>
    %48 = math.tanh %47 : vector<8x10xf32>
    %49 = tpu.concatenate %15, %26, %37, %48 in 1 : vector<8x10xf32>, vector<8x10xf32>, vector<8x10xf32>, vector<8x10xf32> -> vector<8x40xf32>
    %c8 = arith.constant 8 : index
    %c0_23 = arith.constant 0 : index
    %50 = vector.load %arg1[%c8, %c0_23] : memref<184x128xf32, #tpu.memory_space<vmem>>, vector<40x128xf32>
    %cst_24 = arith.constant dense<0.000000e+00> : vector<8x128xf32>
    %51 = tpu.matmul %49, %50, %cst_24 {dimension_numbers = #tpu.dot_dimension_numbers<[1], [0], [0], [1], [0, 0, 1, 1], [], []>} : vector<8x40xf32>, vector<40x128xf32>, vector<8x128xf32> -> vector<8x128xf32>
    %c48 = arith.constant 48 : index
    %c0_25 = arith.constant 0 : index
    %52 = vector.load %arg1[%c48, %c0_25] : memref<184x128xf32, #tpu.memory_space<vmem>>, vector<1x128xf32>
    %53 = vector.broadcast %52 : vector<1x128xf32> to vector<8x128xf32>
    %54 = arith.addf %51, %53 : vector<8x128xf32>
    %c0_26 = arith.constant 0 : index
    %c0_27 = arith.constant 0 : index
    %55 = vector.load %arg2[%c0_26, %c0_27] : memref<8x128xf32, #tpu.memory_space<vmem>>, vector<8x128xf32>
    tpu.vector_store %arg2[%c0_26, %c0_27], %54 {strides = array<i32>} : memref<8x128xf32, #tpu.memory_space<vmem>>, vector<8x128xf32>,
    return
  }
}

</mosaic_0001>

<bundles_post_ra>
// kernel: tpu_custom_call.1
= control target key start
LH: loop header
LB: loop body
LE: loop exit
PB: predicated region body
PF: predicated region fallthrough
CT: control target
= control target key end

     0   :  { %7 = vsyncpa [#allocation3], 0  ;;  %s1305_s0 = inlined_call_operand.hbm [shape: f32[8,128], index: 0, kind: input, shape index: {}]   ;;  %s1306_s1 = inlined_call_operand.hbm [shape: f32[184,128], index: 1, kind: input, shape index: {}]   ;;  %s1307_s2 = inlined_call_operand.hbm [shape: f32[8,128], index: 2, kind: output, shape index: {}]  }
   0x1   :  { %8 = vsyncpa [#allocation6], 0 }
   0x2   :  { %9 = vsyncpa [#allocation4], 0  ;;  %s1165_s9 = smov [#allocation2]   ;;  %s1166_s11 = smov [#allocation5]  }
   0x3   :  { %s16_s10 = sshll.u32 %s1165_s9, 4  ;;  %s25_s12 = sshll.u32 %s1166_s11, 4  ;;  %s17_s10 = int_to_ptr.vmem [resolvable:$true] %s16_s10  ;;  %s1195_s12 = int_to_ptr.vmem [resolvable:$true] %s25_s12 }
   0x4   :  { %s1093_s15 = scalar_lea.hbm %s1305_s0, 128 }
   0x5   :  { %p1094_p0 = scmp.ne.s32.totalorder %s1305_s0, %s1093_s15  ;;  %p1097_p1 = scmp.lt.u32.totalorder %s1093_s15, %s1305_s0 }
   0x7   :  { %p1099_p2 = pnand %p1097_p1, %p1094_p0 }
   0x9   :  { %1102 = shalt.err (!%p1099_p2)
}
   0xa   :  { %s1103_s20 = scalar_lea.vmem %s17_s10, 128  ;;  %p1108_p4 = scmp.lt.s32.totalorder %s17_s10, %s17_s10 }
   0xb   :  { %p1104_p3 = scmp.ne.s32.totalorder %s17_s10, %s1103_s20  ;;  %p1109_p5 = scmp.lt.s32.totalorder %s1103_s20, %s1103_s20 }
   0xd   :  { %p1110_p6 = por %p1109_p5, %p1108_p4 }
   0xf   :  { %p1111_p7 = pnand %p1110_p6, %p1104_p3 }
  0x11   :  { %1114 = shalt.err (!%p1111_p7)
}
  0x12   :  { %19 = dma.hbm_to_vmem [thread:$0]  %s1305_s0, 128, %s17_s10, [#allocation3]  }
  0x13   :  { %s1115_s25 = scalar_lea.hbm %s1306_s1, 2944 }
  0x14   :  { %p1116_p8 = scmp.ne.s32.totalorder %s1306_s1, %s1115_s25  ;;  %p1119_p9 = scmp.lt.u32.totalorder %s1115_s25, %s1306_s1 }
  0x16   :  { %p1121_p10 = pnand %p1119_p9, %p1116_p8 }
  0x18   :  { %1124 = shalt.err (!%p1121_p10)
}
  0x19   :  { %s1125_s30 = scalar_lea.vmem %s1195_s12, 2944  ;;  %p1130_p12 = scmp.lt.s32.totalorder %s1195_s12, %s1195_s12 }
  0x1a   :  { %p1126_p11 = scmp.ne.s32.totalorder %s1195_s12, %s1125_s30  ;;  %p1131_p13 = scmp.lt.s32.totalorder %s1125_s30, %s1125_s30 }
  0x1c   :  { %p1132_p0 = por %p1131_p13, %p1130_p12 }
  0x1e   :  { %p1133_p1 = pnand %p1132_p0, %p1126_p11 }
  0x20   :  { %1136 = shalt.err (!%p1133_p1)
}
  0x21   :  { %s1167_s0 = smov 128   ;;  %s1168_s3 = smov 8  }
  0x22   :  { %31 = dma.hbm_to_vmem [thread:$0]  %s1306_s1, 2944, %s1195_s12, [#allocation6], %s1167_s0, %s1167_s0, %s1168_s3  }
  0x23   :  { %1159 = dma.done.wait [#allocation3], 128  }
  0x24   :  { %1160 = vsyncadd [#allocation3], 4294967168 }
  0x25   :  { %1161 = dma.done.wait [#allocation6], 2944  }
  0x26   :  { %1162 = vsyncadd [#allocation6], 4294964352  ;;  %v1169_v0 = vmov 0.0   ;;  %vm1170_vm0 = vmmov 0   ;;  %v1171_v1 = vmov 0.0|0.0   ;;  %vm128_vm1 = vcmask 1041408  }
  0x27   :  { %950 = vmatprep.subr.mxu0 %v1169_v0  ;;  %952 = vmatprep.mubr.msk.f32.mxu0 %vm1170_vm0, %v1169_v0  ;;  %vm40_vm2 = vcmask 64512   ;;  %v38_v2 = vld [vmem:[#allocation2] sm:$0xff]  ;;  %v39_v3 = vld [vmem:[#allocation5] sm:$0xff]  ;;  %s1172_s1 = smov 122   ;;  %vm1173_vm3 = vmmov 1   ;;  %vm125_vm5 = vcmask 80896  }
  0x28   :  { %1032 = vmatprep.subr.bf16.mxu1 %v1171_v1  ;;  %973 = vmatprep.mubr.msk.f32.mxu1 %vm1170_vm0, %v1169_v0  ;;  %v114_v4 = vld [vmem:[#allocation5 + $0x38] sm:$0xff]  ;;  %v115_v5 = vld [vmem:[#allocation5 + $0x40] sm:$0x3]  ;;  %vm1232_vm4 = vmpackc.low %vm128_vm1, %vm1173_vm3  ;;  %s1174_s6 = smov 10   ;;  %s1175_s7 = smov 118   ;;  %vm790_vm6 = vcmask 162816  }
  0x29   :  { %123 = vrot.lane.b32.xlu0 %v38_v2, %s1172_s1  ;;  %951 = vmatpush3.msra.mxu0 %v39_v3  ;;  %v1025_v7 = vpack.c.bf16 %v115_v5, %v114_v4  ;;  %v116_v9 = vld [vmem:[#allocation5 + $0x48] sm:$0xff]  ;;  %v117_v10 = vld [vmem:[#allocation5 + $0x50] sm:$0x3]  ;;  %v281_v19 = vld [vmem:[#allocation5 + $0x58] sm:$0xff]  ;;  %s1176_s8 = smov 20   ;;  %s1177_s9 = smov 108  }
  0x2a   :  { %953 = vmatmul.mubr.msk.f32.vlgmr.msra.gmra.mrb[0].mxu0 %vm40_vm2, %v38_v2  ;;  %1024 = vmatprep.subr.bf16.mxu0 %v1171_v1  ;;  %v1029_v11 = vpack.c.bf16 %v117_v10, %v116_v9  ;;  %v896_v14 = vld [vmem:[#allocation5 + $0x31] ss:$0 sm:$0xff]  ;;  %v282_v20 = vld [vmem:[#allocation5 + $0x60] sm:$0x3]  ;;  %v283_v26 = vld [vmem:[#allocation5 + $0x68] sm:$0xff]  ;;  %s1178_s10 = smov 30  }
  0x2b   :  { %959 = vmatprep.mubr.msk.f32.mxu0 %vm1170_vm0, %v1169_v0  ;;  %1027 = vmatpush3.bf16.msk.msra.mxu0 %vm1232_vm4, %v1025_v7  ;;  %v1033_v21 = vpack.c.bf16 %v282_v20, %v281_v19  ;;  %v284_v27 = vld [vmem:[#allocation5 + $0x70] sm:$0x3]  ;;  %v901_v29 = vld [vmem:[#allocation5 + $0x32] ss:$0 sm:$0xff]  ;;  %v449_v36 = vld [vmem:[#allocation5 + $0x78] sm:$0xff]  ;;  %vm792_vm7 = vcmask 244736  }
  0x2c   :  { %1028 = vmatprep.subr.bf16.mxu0 %v1171_v1  ;;  %v1037_v28 = vpack.c.bf16 %v284_v27, %v283_v26  ;;  %v450_v37 = vld [vmem:[#allocation5 + $0x80] sm:$0x3]  ;;  %v451_v43 = vld [vmem:[#allocation5 + $0x88] sm:$0xff]  ;;  %v452_v44 = vld [vmem:[#allocation5 + $0x90] sm:$0x3]  ;;  %vm804_vm8 = vcmask 326656  }
  0x2d   :  { %1035 = vmatpush3.bf16.msk.msra.mxu1 %vm1232_vm4, %v1033_v21  ;;  %v1041_v38 = vpack.c.bf16 %v450_v37, %v449_v36  ;;  %v1045_v45 = vpack.c.bf16 %v452_v44, %v451_v43  ;;  %v906_v46 = vld [vmem:[#allocation5 + $0x33] ss:$0 sm:$0xff]  ;;  %v619_v53 = vld [vmem:[#allocation5 + $0x98] sm:$0xff]  ;;  %v620_v54 = vld [vmem:[#allocation5 + $0xa0] sm:$0x3]  ;;  %s1179_s11 = smov [#allocation7]  }
  0x2e   :  { %1040 = vmatprep.subr.bf16.mxu1 %v1171_v1  ;;  %v1049_v55 = vpack.c.bf16 %v620_v54, %v619_v53  ;;  %v621_v62 = vld [vmem:[#allocation5 + $0xa8] sm:$0xff]  ;;  %v622_v63 = vld [vmem:[#allocation5 + $0xb0] sm:$0x3]  ;;  %v911_v3 = vld [vmem:[#allocation5 + $0x34] ss:$0 sm:$0xff]  ;;  %s885_s12 = sshll.u32 %s1179_s11, 4  ;;  %s886_s12 = int_to_ptr.vmem [resolvable:$true] %s885_s12 }
  0x2f   :  { %v1053_v2 = vpack.c.bf16 %v622_v63, %v621_v62  ;;  %v794_v9 = vld [vmem:[#allocation5 + $0x8] sm:$0xff]  ;;  %v795_v10 = vld [vmem:[#allocation5 + $0x10] sm:$0xff]  ;;  %s1137_s13 = scalar_lea.vmem %s886_s12, 128  ;;  %p1142_p3 = scmp.lt.s32.totalorder %s886_s12, %s886_s12 }
  0x30   :  { %v798_v6 = vld [vmem:[#allocation5 + $0x28] sm:$0xff]  ;;  %p1138_p2 = scmp.ne.s32.totalorder %s886_s12, %s1137_s13  ;;  %p1143_p4 = scmp.lt.s32.totalorder %s1137_s13, %s1137_s13 }
  0x32   :  { %p1144_p5 = por %p1143_p4, %p1142_p3 }
  0x34   :  { %p1145_p6 = pnand %p1144_p5, %p1138_p2 }
  0x9b   :  { %v124_v8 = vpop.permute.xlu0 %123 }
  0x9c   :  { %960 = vmatmul.mubr.msk.f32.vlgmr.msra.gmra.mrb[2].mxu0 %vm125_vm5, %v124_v8 }
  0x9d   :  { %966 = vmatprep.mubr.msk.f32.mxu0 %vm1170_vm0, %v1169_v0  ;;  %1031 = vmatpush3.bf16.msk.msra.mxu0 %vm1232_vm4, %v1029_v11  ;;  %v796_v11 = vld [vmem:[#allocation5 + $0x18] sm:$0xff] }
  0x9e   :  { %1036 = vmatprep.subr.bf16.mxu0 %v1171_v1 }
  0xfd   :  { %v1248_v12 = vpop.f32.mrb[0].mxu0 }
  0xfe   :  { %v954_v13 = vpop.f32.mrb[1].mxu0 }
  0xff   :  { %v1057_v13 = vpack.c.bf16 %v795_v10, %v794_v9 }
 0x16f   :  { %v198_v15 = vpop.f32.mrb[2].mxu0 }
 0x170   :  { %v199_v16 = vadd.f32 %v896_v14, %v198_v15  ;;  %v961_v17 = vpop.f32.mrb[3].mxu0  ;;  %v797_v14 = vld [vmem:[#allocation5 + $0x20] sm:$0xff] }
 0x171   :  { %v1060_v15 = vpack.c.bf16 %v797_v14, %v796_v11 }
 0x172   :  { %1077 = vtanh.f32 %v199_v16 }
 0x17c   :  { %v1078_v18 = vpop.eup %1077 }
 0x17d   :  { %967 = vmatmul.mubr.msk.f32.vlgmr.msra.gmra.mrb[4].mxu0 %vm125_vm5, %v1078_v18 }
 0x17e   :  { %980 = vmatprep.mubr.msk.f32.mxu0 %vm1170_vm0, %v1169_v0  ;;  %1039 = vmatpush3.bf16.msk.msra.mxu0 %vm1232_vm4, %v1037_v28 }
 0x17f   :  { %1044 = vmatprep.subr.bf16.mxu0 %v1171_v1 }
 0x250   :  { %v275_v22 = vpop.f32.mrb[4].mxu0 }
 0x251   :  { %v279_v23 = vadd.f32 %v275_v22, %v1248_v12  ;;  %v968_v24 = vpop.f32.mrb[5].mxu0  ;;  %v916_v22 = vld [vmem:[#allocation5 + $0x30] ss:$0 sm:$0xff] }
 0x253   :  { %1079 = vtanh.f32 %v279_v23 }
 0x25d   :  { %v1080_v25 = vpop.eup %1079 }
 0x25e   :  { %974 = vmatmul.mubr.msk.f32.vlgmr.msra.gmra.mrb[0].mxu1 %vm125_vm5, %v1080_v25 }
 0x25f   :  { %987 = vmatprep.mubr.msk.f32.mxu1 %vm1170_vm0, %v1169_v0  ;;  %1043 = vmatpush3.bf16.msk.msra.mxu1 %vm1232_vm4, %v1041_v38 }
 0x260   :  { %1048 = vmatprep.subr.bf16.mxu1 %v1171_v1 }
 0x331   :  { %v362_v30 = vpop.f32.mrb[0].mxu1 }
 0x332   :  { %v363_v31 = vadd.f32 %v901_v29, %v362_v30  ;;  %v975_v32 = vpop.f32.mrb[1].mxu1 }
 0x334   :  { %1081 = vtanh.f32 %v363_v31 }
 0x33e   :  { %v1082_v33 = vpop.eup %1081 }
 0x33f   :  { %981 = vmatmul.mubr.msk.f32.vlgmr.msra.gmra.mrb[6].mxu0 %vm125_vm5, %v1082_v33 }
 0x340   :  { %994 = vmatprep.mubr.msk.f32.mxu0 %vm1170_vm0, %v1169_v0  ;;  %1047 = vmatpush3.bf16.msk.msra.mxu0 %vm1232_vm4, %v1045_v45 }
 0x341   :  { %1052 = vmatprep.subr.bf16.mxu0 %v1171_v1 }
 0x412   :  { %v439_v34 = vpop.f32.mrb[6].mxu0 }
 0x413   :  { %444 = vrot.lane.b32.xlu0 %v439_v34, %s1174_s6  ;;  %v982_v35 = vpop.f32.mrb[7].mxu0 }
 0x485   :  { %v445_v39 = vpop.permute.xlu0 %444 }
 0x486   :  { %v447_v40 = vadd.f32 %v445_v39, %v1248_v12 }
 0x488   :  { %1083 = vtanh.f32 %v447_v40 }
 0x492   :  { %v1084_v41 = vpop.eup %1083 }
 0x493   :  { %459 = vrot.lane.b32.xlu1 %v1084_v41, %s1175_s7  ;;  %v789_v59 = vsel %vm125_vm5, %v1080_v25, %v1084_v41 }
 0x505   :  { %v460_v42 = vpop.permute.xlu1 %459 }
 0x506   :  { %988 = vmatmul.mubr.msk.f32.vlgmr.msra.gmra.mrb[2].mxu1 %vm125_vm5, %v460_v42 }
 0x507   :  { %1001 = vmatprep.mubr.msk.f32.mxu1 %vm1170_vm0, %v1169_v0  ;;  %1051 = vmatpush3.bf16.msk.msra.mxu1 %vm1232_vm4, %v1049_v55 }
 0x508   :  { %1056 = vmatprep.subr.bf16.mxu1 %v1171_v1 }
 0x5d9   :  { %v532_v47 = vpop.f32.mrb[2].mxu1 }
 0x5da   :  { %v533_v48 = vadd.f32 %v906_v46, %v532_v47  ;;  %v989_v49 = vpop.f32.mrb[3].mxu1 }
 0x5dc   :  { %1085 = vtanh.f32 %v533_v48 }
 0x5e6   :  { %v1086_v50 = vpop.eup %1085 }
 0x5e7   :  { %995 = vmatmul.mubr.msk.f32.vlgmr.msra.gmra.mrb[8].mxu0 %vm125_vm5, %v1086_v50 }
 0x5e8   :  { %1008 = vmatprep.mubr.msk.f32.mxu0 %vm1170_vm0, %v1169_v0  ;;  %1055 = vmatpush3.bf16.msk.msra.mxu0 %vm1232_vm4, %v1053_v2 }
 0x6ba   :  { %v609_v51 = vpop.f32.mrb[8].mxu0 }
 0x6bb   :  { %614 = vrot.lane.b32.xlu1 %v609_v51, %s1176_s8  ;;  %v996_v52 = vpop.f32.mrb[9].mxu0 }
 0x72d   :  { %v615_v56 = vpop.permute.xlu1 %614 }
 0x72e   :  { %v617_v57 = vadd.f32 %v615_v56, %v1248_v12 }
 0x730   :  { %1087 = vtanh.f32 %v617_v57 }
 0x73a   :  { %v1088_v58 = vpop.eup %1087 }
 0x73b   :  { %629 = vrot.lane.b32.xlu0 %v1088_v58, %s1177_s9  ;;  %v791_v60 = vsel %vm790_vm6, %v789_v59, %v1088_v58 }
 0x7ad   :  { %v630_v61 = vpop.permute.xlu0 %629 }
 0x7ae   :  { %1002 = vmatmul.mubr.msk.f32.vlgmr.msra.gmra.mrb[4].mxu1 %vm125_vm5, %v630_v61 }
 0x7af   :  { %1021 = vmatprep.mubr.msk.f32.mxu1 %vm1170_vm0, %v1169_v0  ;;  %1058 = vmatpush3.bf16.msra.mxu1 %v1057_v13 }
 0x7b0   :  { %1059 = vmatprep.subr.bf16.mxu1 %v1171_v1 }
 0x7b3   :  { %1061 = vmatpush3.bf16.msra.mxu1 %v1060_v15 }
 0x7b4   :  { %1019 = vmatprep.subr.mxu1 %v1169_v0 }
 0x7b7   :  { %1020 = vmatpush3.msra.mxu1 %v798_v6 }
 0x881   :  { %v702_v4 = vpop.f32.mrb[4].mxu1 }
 0x882   :  { %v703_v5 = vadd.f32 %v911_v3, %v702_v4  ;;  %v1003_v7 = vpop.f32.mrb[5].mxu1 }
 0x884   :  { %1089 = vtanh.f32 %v703_v5 }
 0x88e   :  { %v1090_v8 = vpop.eup %1089 }
 0x88f   :  { %1009 = vmatmul.mubr.msk.f32.vlgmr.msra.gmra.mrb[10].mxu0 %vm125_vm5, %v1090_v8 }
 0x962   :  { %v779_v16 = vpop.f32.mrb[10].mxu0 }
 0x963   :  { %784 = vrot.lane.b32.xlu1 %v779_v16, %s1178_s10  ;;  %v1010_v17 = vpop.f32.mrb[11].mxu0 }
 0x9d5   :  { %v785_v18 = vpop.permute.xlu1 %784 }
 0x9d6   :  { %v787_v19 = vadd.f32 %v785_v18, %v1248_v12 }
 0x9d8   :  { %1091 = vtanh.f32 %v787_v19 }
 0x9e2   :  { %v1092_v20 = vpop.eup %1091 }
 0x9e3   :  { %v793_v21 = vsel %vm792_vm7, %v791_v60, %v1092_v20 }
 0x9e4   :  { %1022 = vmatmul.mubr.msk.f32.vlgmr.msra.gmra.mrb[6].mxu1 %vm804_vm8, %v793_v21 }
 0xab7   :  { %v874_v1 = vpop.f32.mrb[6].mxu1 }
 0xab8   :  { %v875_v0 = vadd.f32 %v916_v22, %v874_v1  ;;  %v1023_v23 = vpop.f32.mrb[7].mxu1 }
 0xaba   :  { %878 = vst [vmem:[#allocation7] sm:$0xff] %v875_v0 }
 0xabb   :  { %1148 = shalt.err (!%p1145_p6)
}
 0xabc   :  { %s1149_s16 = scalar_lea.hbm %s1307_s2, 128 }
 0xabd   :  { %p1150_p7 = scmp.ne.s32.totalorder %s1307_s2, %s1149_s16  ;;  %p1153_p8 = scmp.lt.u32.totalorder %s1149_s16, %s1307_s2 }
 0xabf   :  { %p1155_p9 = pnand %p1153_p8, %p1150_p7 }
 0xac1   :  { %1158 = shalt.err (!%p1155_p9)
}
 0xac2   :  { %888 = dma.vmem_to_hbm [thread:$0]  %s886_s12, 128, %s1307_s2, [#allocation4]  }
 0xac3   :  { %1163 = dma.done.wait [#allocation4], 128  }
 0xac4   :  { %1164 = vsyncadd [#allocation4], 4294967168 }
 0xac5   :  { %892 = vsyncpa [#allocation3], 1 }
 0xac6   :  { %893 = vsyncpa [#allocation6], 1 }
 0xac7   :  { %894 = vsyncpa [#allocation4], 1 }

</bundles_post_ra>
